<compile_context>
chip_gen: v5e
topology: v5e:2x2
jax: 0.10.0
libtpu: 0.0.40
codegen_flags: <defaults>
</compile_context>

<pallas_src>
import functools

import jax
import jax.numpy as jnp
from jax import lax
from jax.experimental import pallas as pl
from jax.experimental.pallas import tpu as pltpu


# ----------------------------- tuning constants ------------------------------

_VMEM_LIMIT = 48 * 1024 * 1024    # raise v5e(16MiB)/v6e(32MiB) scoped defaults,
                                  # stay safely under v7x's 64 MiB physical VMEM
_STEP_BUDGET = 40 * 1024 * 1024   # per-grid-step working-set target (incl. resident q/k)
_MAX_WINDOW_UNROLL = 16           # cap on windows handled per grid step


# ----------------------------- kernels ---------------------------------------


def _project_kernel(x_ref, w_ref, b_ref, q_ref, k_ref, v_ref, *, c):
    """qkv = W @ x + b on a lane-dense (c, ct) column tile; channel-major outs."""
    f32 = jnp.float32
    qkv = jnp.dot(w_ref[...], x_ref[...], preferred_element_type=f32) + b_ref[...]
    q_ref[...] = qkv[:c].astype(q_ref.dtype)
    k_ref[...] = qkv[c:2 * c].astype(k_ref.dtype)
    v_ref[...] = qkv[2 * c:].astype(v_ref.dtype)


def _mix_attend_kernel(a_ref, q_ref, k_ref, v_ref, o_ref, q2_s, k2_s,
                       *, c, L, P, wb, cdt):
    """Fused cross-window mixing + per-window relu attention for wb windows.

    a_ref : (L, L) f32   window affinities (resident)
    q_ref : (c, L, P)    projected q (resident, compute dtype)
    k_ref : (c, L, P)    projected k (resident, compute dtype)
    v_ref : (c, wb*P)    projected v for this window block (streamed)
    o_ref : (c, wb*P)    lane-dense output block
    q2_s  : (c, wb, P)   f32 scratch (mixed q for this block's windows)
    k2_s  : (c, wb, P)   f32 scratch (mixed k)
    """
    f32 = jnp.float32
    start = pl.multiple_of(pl.program_id(0) * wb, wb)
    a_blk = a_ref[pl.ds(start, wb), :].astype(cdt)                 # (wb, L)

    def mix_channel(ch):
        # per-channel slabs q_ref[ch] are contiguous (L, P) matrices.
        q2_s[ch] = jnp.dot(a_blk, q_ref[ch], preferred_element_type=f32)
        k2_s[ch] = jnp.dot(a_blk, k_ref[ch], preferred_element_type=f32)

    if c <= 32:                                 # short static loop: unroll
        for ch in range(c):
            mix_channel(ch)
    else:                                       # bound code size for wide nets
        def body(ch, carry):
            mix_channel(ch)
            return carry
        lax.fori_loop(0, c, body, 0)

    for t in range(wb):                         # wb is small, static and capped
        sl = slice(t * P, (t + 1) * P)
        q2_t = jnp.squeeze(q2_s[:, t:t + 1, :], axis=1).astype(cdt)   # (c, P)
        k2_t = jnp.squeeze(k2_s[:, t:t + 1, :], axis=1).astype(cdt)   # (c, P)
        # s^T[q, p] = sum_ch k2[ch, q] * q2[ch, p]
        s_t = lax.dot_general(k2_t, q2_t, (((0,), (0,)), ((), ())),
                              preferred_element_type=f32)             # (P, P)
        s_t = jnp.maximum(s_t, 0.0).astype(cdt)
        # o[ch, p] = sum_q v[ch, q] * s^T[q, p]   (both dot operands natural)
        o_t = lax.dot_general(v_ref[:, sl], s_t, (((1,), (0,)), ((), ())),
                              preferred_element_type=f32)             # (c, P)
        o_ref[:, sl] = o_t.astype(o_ref.dtype)


# ----------------------------- tiling helpers ---------------------------------


def _pick_col_tile(n, per_col_bytes):
    """Largest multiple-of-128 divisor of n whose working set fits the budget."""
    if n % 128 != 0:
        return n
    max_cols = max(128, _STEP_BUDGET // max(per_col_bytes, 1))
    best = 128
    t = 128
    while t <= n:
        if n % t == 0 and t <= max_cols:
            best = t
        t += 128
    return best


def _pick_window_block(L, P, c, cdb):
    """Pick windows-per-step for the fused kernel (largest block that fits)."""
    resident = 2 * (2 * L * c * P * cdb)            # q + k resident (x2 buffers, safe)
    cands = [wb for wb in range(1, L + 1)
             if L % wb == 0 and ((wb * P) % 128 == 0 or wb == L)]

    def step_bytes(wb):
        blk = c * wb * P
        return (resident
                + 2 * blk * (cdb + 4)               # v in + o out, double buffered
                + 2 * blk * 4                       # q2 / k2 scratch
                + blk * 4 + P * P * 4)              # matmul transients

    def score(wb):
        nblk = L // wb
        return (wb <= _MAX_WINDOW_UNROLL,           # bound the unrolled attend loop
                step_bytes(wb) <= _STEP_BUDGET,     # fit the VMEM budget
                nblk >= 2,                          # keep the pipeline busy
                nblk % 2 == 0,                      # even split across 2 TCs (v7x)
                wb)                                 # otherwise: biggest block wins
    return max(cands, key=score)


# ----------------------------- wrapper -----------------------------------------


@functools.partial(jax.jit, static_argnames=("n_win", "compute_dtype"))
def ba_pallas(x, w, b, n_win, compute_dtype=jnp.bfloat16):
    """x: (1, c, h, w) f32 NCHW; w: (3c, c); b: (3c,).  Returns (1, c, h, w)."""
    B, c, h, wd = x.shape
    if B != 1:
        # TODO(synk): the PyTorch module hard-codes reshape(1, ...); batch > 1
        # is not representable without changing the module semantics.
        raise ValueError(f"BA requires batch == 1, got {B}")
    assert h % n_win == 0 and wd % n_win == 0
    hs, ws = h // n_win, wd // n_win
    L, P = n_win * n_win, hs * ws
    N = L * P
    f32 = jnp.float32
    cdt = jnp.dtype(compute_dtype)
    cdb = cdt.itemsize

    # --- glue: NCHW -> channel-major, window-major flat (c, N) ---
    # TODO(synk): fold this relayout into the projection BlockSpec (per-window-row
    # blocks of the raw NCHW input) to save one XLA pass over x.
    xw = x.reshape(c, n_win, hs, n_win, ws).astype(f32)
    x_t = jnp.transpose(xw, (0, 1, 3, 2, 4)).reshape(c, N)

    w_f = w.astype(f32)                          # (3c, c)
    b_col = b.reshape(3 * c, 1).astype(f32)

    # --- hoisted a_r: per-window means commute with the affine projection ---
    xm = jnp.mean(xw, axis=(2, 4)).reshape(c, L)                     # (c, L)
    q_r = w_f[:c] @ xm + b_col[:c]                                   # (c, L)
    k_r = w_f[c:2 * c] @ xm + b_col[c:2 * c]                         # (c, L)
    a_r = jax.nn.relu(q_r.T @ k_r).astype(f32)                       # (L, L)

    # ---- call 1: fused qkv projection, lane-dense channel-major outputs -----
    ct = _pick_col_tile(N, 2 * c * (4 + 3 * cdb))
    q_cm, k_cm, v_cm = pl.pallas_call(
        functools.partial(_project_kernel, c=c),
        grid=(N // ct,),
        in_specs=[
            pl.BlockSpec((c, ct), lambda i: (0, i)),
            pl.BlockSpec((3 * c, c), lambda i: (0, 0)),
            pl.BlockSpec((3 * c, 1), lambda i: (0, 0)),
        ],
        out_specs=(
            pl.BlockSpec((c, ct), lambda i: (0, i)),
            pl.BlockSpec((c, ct), lambda i: (0, i)),
            pl.BlockSpec((c, ct), lambda i: (0, i)),
        ),
        out_shape=(
            jax.ShapeDtypeStruct((c, N), cdt),
            jax.ShapeDtypeStruct((c, N), cdt),
            jax.ShapeDtypeStruct((c, N), cdt),
        ),
        compiler_params=pltpu.CompilerParams(
            dimension_semantics=("parallel",),
            vmem_limit_bytes=_VMEM_LIMIT),
        cost_estimate=pl.CostEstimate(
            flops=2 * N * c * 3 * c + 3 * N * c,
            transcendentals=0,
            bytes_accessed=N * c * 4 + 3 * N * c * cdb + 3 * c * c * 4 + 3 * c * 4),
    )(x_t, w_f, b_col)

    # free metadata reshapes: contiguous per-channel (L, P) slabs for the mix
    q3 = q_cm.reshape(c, L, P)
    k3 = k_cm.reshape(c, L, P)

    # ---- call 2: fused cross-window mixing + per-window relu attention ------
    # q/k stay resident in VMEM across the window-block grid (constant index
    # maps), so q2/k2 never round-trip through HBM.
    wb = _pick_window_block(L, P, c, cdb)
    nblk = L // wb
    WP = wb * P
    o_t = pl.pallas_call(
        functools.partial(_mix_attend_kernel, c=c, L=L, P=P, wb=wb, cdt=cdt),
        grid=(nblk,),
        in_specs=[
            pl.BlockSpec((L, L), lambda i: (0, 0)),          # a_r (tiny, resident)
            pl.BlockSpec((c, L, P), lambda i: (0, 0, 0)),    # q (resident)
            pl.BlockSpec((c, L, P), lambda i: (0, 0, 0)),    # k (resident)
            pl.BlockSpec((c, WP), lambda i: (0, i)),         # v (streamed)
        ],
        out_specs=pl.BlockSpec((c, WP), lambda i: (0, i)),
        out_shape=jax.ShapeDtypeStruct((c, N), f32),
        scratch_shapes=[pltpu.VMEM((c, wb, P), f32),
                        pltpu.VMEM((c, wb, P), f32)],
        compiler_params=pltpu.CompilerParams(
            dimension_semantics=("parallel",),
            vmem_limit_bytes=_VMEM_LIMIT),
        cost_estimate=pl.CostEstimate(
            flops=4 * c * L * L * P + 4 * c * P * N + N * P,
            transcendentals=0,
            bytes_accessed=L * L * 4 + 3 * N * c * cdb + N * c * 4),
    )(a_r, q3, k3, v_cm)

    # --- glue: lane-dense (c, N) window-major -> NCHW (F.fold inverse) ---
    o = o_t.reshape(c, n_win, n_win, hs, ws)
    o = jnp.transpose(o, (0, 1, 3, 2, 4)).reshape(1, c, h, wd)
    return o


# ----------------------------- reference ---------------------------------------


def ba_reference(x, w, b, n_win):
    """Pure-JAX mirror of the PyTorch forward (for validation)."""
    B, c, h, wd = x.shape
    hs, ws = h // n_win, wd // n_win
    L, P = n_win * n_win, hs * ws
    xw = x.reshape(c, n_win, hs, n_win, ws)
    xw = jnp.transpose(xw, (1, 3, 2, 4, 0)).reshape(1, L, P, c)
    qkv = xw @ w.T + b                                               # (1, L, P, 3c)
    q, k, v = qkv[..., :c], qkv[..., c:2 * c], qkv[..., 2 * c:]
    q_r, k_r = q.mean(axis=2), k.mean(axis=2)
    a_r = jax.nn.relu(jnp.einsum('blc,bmc->blm', q_r, k_r))
    k2 = jnp.einsum('bml,blpc->bmpc', a_r, k)
    q2 = jnp.einsum('bml,blpc->bmpc', a_r, q)
    s = jax.nn.relu(jnp.einsum('blpc,blqc->blpq', q2, k2))
    o = jnp.einsum('blpq,blqc->blpc', s, v)
    o = o.reshape(n_win, n_win, hs, ws, c)
    o = jnp.transpose(o, (4, 0, 2, 1, 3)).reshape(1, c, h, wd)
    return o


# ----------------------------- self-test ----------------------------------------


if __name__ == "__main__":
    key = jax.random.PRNGKey(0)
    kx, kw, kb = jax.random.split(key, 3)

    B, C, H, W = 1, 4, 16, 16      # module's reshape(1, ...) requires batch == 1
    n_win = 2                       # topk is unused by the forward pass
    x = jax.random.normal(kx, (B, C, H, W), jnp.float32)

    bound = 1.0 / (C ** 0.5)        # deterministic Linear(in_c, 3*in_c) params
    w = jax.random.uniform(kw, (3 * C, C), jnp.float32, -bound, bound)
    b = jax.random.uniform(kb, (3 * C,), jnp.float32, -bound, bound)

    ref = ba_reference(x, w, b, n_win)
    scale = 1.0 + float(jnp.max(jnp.abs(ref)))

    # f32 path: strict tolerance.
    out_f32 = jax.block_until_ready(
        ba_pallas(x, w, b, n_win, compute_dtype=jnp.float32))
    assert out_f32.shape == (B, C, H, W)
    err = float(jnp.max(jnp.abs(out_f32 - ref)))
    assert err < 1e-2 * scale, f"f32 mismatch vs reference: {err}"

    # bf16 default path (v6e/v7x recommendation): bf16-sized tolerance.
    out_bf16 = jax.block_until_ready(ba_pallas(x, w, b, n_win))
    err_bf16 = float(jnp.max(jnp.abs(out_bf16 - ref)))
    assert err_bf16 < 5e-2 * scale, f"bf16 mismatch vs reference: {err_bf16}"

    print("KERNEL_OK")
</pallas_src>

<mosaic_0001>
module attributes {stable_mosaic.version = 11 : i64} {
  func.func @_project_kernel(%arg0: i32, %arg1: memref<4x256xf32, #tpu.memory_space<vmem>>, %arg2: memref<12x4xf32, #tpu.memory_space<vmem>>, %arg3: memref<12x1xf32, #tpu.memory_space<vmem>>, %arg4: memref<4x256xf32, #tpu.memory_space<vmem>>, %arg5: memref<4x256xf32, #tpu.memory_space<vmem>>, %arg6: memref<4x256xf32, #tpu.memory_space<vmem>>) attributes {dimension_semantics = [#tpu.dimension_semantics<parallel>], iteration_bounds = array<i64: 1>, scalar_prefetch = 0 : i64, scratch_operands = 0 : i64, tpu.core_type = #tpu.core_type<tc>, window_params = [{transform_indices = @transform_0, window_bounds = array<i64: 4, 256>}, {pipeline_mode = #tpu.pipeline_mode<synchronous>, transform_indices = @transform_1, window_bounds = array<i64: 12, 4>}, {pipeline_mode = #tpu.pipeline_mode<synchronous>, transform_indices = @transform_2, window_bounds = array<i64: 12, 1>}, {transform_indices = @transform_3, window_bounds = array<i64: 4, 256>}, {transform_indices = @transform_4, window_bounds = array<i64: 4, 256>}, {transform_indices = @transform_5, window_bounds = array<i64: 4, 256>}]} {
    %c0 = arith.constant 0 : index
    %c0_0 = arith.constant 0 : index
    %0 = vector.load %arg2[%c0, %c0_0] : memref<12x4xf32, #tpu.memory_space<vmem>>, vector<12x4xf32>
    %c0_1 = arith.constant 0 : index
    %c0_2 = arith.constant 0 : index
    %1 = vector.load %arg1[%c0_1, %c0_2] : memref<4x256xf32, #tpu.memory_space<vmem>>, vector<4x256xf32>
    %cst = arith.constant dense<0.000000e+00> : vector<12x256xf32>
    %2 = tpu.matmul %0, %1, %cst {dimension_numbers = #tpu.dot_dimension_numbers<[1], [0], [0], [1], [0, 0, 1, 1], [], []>} : vector<12x4xf32>, vector<4x256xf32>, vector<12x256xf32> -> vector<12x256xf32>
    %c0_3 = arith.constant 0 : index
    %c0_4 = arith.constant 0 : index
    %3 = vector.load %arg3[%c0_3, %c0_4] : memref<12x1xf32, #tpu.memory_space<vmem>>, vector<12x1xf32>
    %4 = vector.broadcast %3 : vector<12x1xf32> to vector<12x256xf32>
    %5 = arith.addf %2, %4 : vector<12x256xf32>
    %6 = vector.extract_strided_slice %5 {offsets = [0, 0], sizes = [4, 256], strides = [1, 1]} : vector<12x256xf32> to vector<4x256xf32>
    %c0_5 = arith.constant 0 : index
    %c0_6 = arith.constant 0 : index
    %7 = vector.load %arg4[%c0_5, %c0_6] : memref<4x256xf32, #tpu.memory_space<vmem>>, vector<4x256xf32>
    tpu.vector_store %arg4[%c0_5, %c0_6], %6 {strides = array<i32>} : memref<4x256xf32, #tpu.memory_space<vmem>>, vector<4x256xf32>,
    %8 = vector.extract_strided_slice %5 {offsets = [4, 0], sizes = [4, 256], strides = [1, 1]} : vector<12x256xf32> to vector<4x256xf32>
    %c0_7 = arith.constant 0 : index
    %c0_8 = arith.constant 0 : index
    %9 = vector.load %arg5[%c0_7, %c0_8] : memref<4x256xf32, #tpu.memory_space<vmem>>, vector<4x256xf32>
    tpu.vector_store %arg5[%c0_7, %c0_8], %8 {strides = array<i32>} : memref<4x256xf32, #tpu.memory_space<vmem>>, vector<4x256xf32>,
    %10 = vector.extract_strided_slice %5 {offsets = [8, 0], sizes = [4, 256], strides = [1, 1]} : vector<12x256xf32> to vector<4x256xf32>
    %c0_9 = arith.constant 0 : index
    %c0_10 = arith.constant 0 : index
    %11 = vector.load %arg6[%c0_9, %c0_10] : memref<4x256xf32, #tpu.memory_space<vmem>>, vector<4x256xf32>
    tpu.vector_store %arg6[%c0_9, %c0_10], %10 {strides = array<i32>} : memref<4x256xf32, #tpu.memory_space<vmem>>, vector<4x256xf32>,
    return
  }
  func.func @transform_0(%arg0: i32) -> (i32, i32) {
    %c0_i32 = arith.constant 0 : i32
    %c0_i32_0 = arith.constant 0 : i32
    return %c0_i32, %arg0 : i32, i32
  }
  func.func @transform_1(%arg0: i32) -> (i32, i32) {
    %c0_i32 = arith.constant 0 : i32
    %c0_i32_0 = arith.constant 0 : i32
    %c0_i32_1 = arith.constant 0 : i32
    return %c0_i32, %c0_i32_0 : i32, i32
  }
  func.func @transform_2(%arg0: i32) -> (i32, i32) {
    %c0_i32 = arith.constant 0 : i32
    %c0_i32_0 = arith.constant 0 : i32
    %c0_i32_1 = arith.constant 0 : i32
    return %c0_i32, %c0_i32_0 : i32, i32
  }
  func.func @transform_3(%arg0: i32) -> (i32, i32) {
    %c0_i32 = arith.constant 0 : i32
    %c0_i32_0 = arith.constant 0 : i32
    return %c0_i32, %arg0 : i32, i32
  }
  func.func @transform_4(%arg0: i32) -> (i32, i32) {
    %c0_i32 = arith.constant 0 : i32
    %c0_i32_0 = arith.constant 0 : i32
    return %c0_i32, %arg0 : i32, i32
  }
  func.func @transform_5(%arg0: i32) -> (i32, i32) {
    %c0_i32 = arith.constant 0 : i32
    %c0_i32_0 = arith.constant 0 : i32
    return %c0_i32, %arg0 : i32, i32
  }
}

module attributes {stable_mosaic.version = 11 : i64} {
  func.func @_mix_attend_kernel(%arg0: i32, %arg1: memref<4x4xf32, #tpu.memory_space<vmem>>, %arg2: memref<4x4x64xf32, #tpu.memory_space<vmem>>, %arg3: memref<4x4x64xf32, #tpu.memory_space<vmem>>, %arg4: memref<4x128xf32, #tpu.memory_space<vmem>>, %arg5: memref<4x128xf32, #tpu.memory_space<vmem>>, %arg6: memref<4x2x64xf32, #tpu.memory_space<vmem>>, %arg7: memref<4x2x64xf32, #tpu.memory_space<vmem>>) attributes {dimension_semantics = [#tpu.dimension_semantics<parallel>], iteration_bounds = array<i64: 2>, scalar_prefetch = 0 : i64, scratch_operands = 2 : i64, tpu.core_type = #tpu.core_type<tc>, window_params = [{pipeline_mode = #tpu.pipeline_mode<synchronous>, transform_indices = @transform_0, window_bounds = array<i64: 4, 4>}, {pipeline_mode = #tpu.pipeline_mode<synchronous>, transform_indices = @transform_1, window_bounds = array<i64: 4, 4, 64>}, {pipeline_mode = #tpu.pipeline_mode<synchronous>, transform_indices = @transform_2, window_bounds = array<i64: 4, 4, 64>}, {transform_indices = @transform_3, window_bounds = array<i64: 4, 128>}, {transform_indices = @transform_4, window_bounds = array<i64: 4, 128>}]} {
    %c2_i32 = arith.constant 2 : i32
    %0 = arith.muli %arg0, %c2_i32 : i32
    %1 = tpu.assume_multiple %0, 2 : i32
    %2 = arith.index_cast %1 : i32 to index
    %c0 = arith.constant 0 : index
    %3 = vector.load %arg1[%2, %c0] : memref<4x4xf32, #tpu.memory_space<vmem>>, vector<2x4xf32>
    %c0_0 = arith.constant 0 : index
    %c0_1 = arith.constant 0 : index
    %c0_2 = arith.constant 0 : index
    %4 = vector.load %arg2[%c0_0, %c0_1, %c0_2] : memref<4x4x64xf32, #tpu.memory_space<vmem>>, vector<1x4x64xf32>
    %5 = vector.shape_cast %4 : vector<1x4x64xf32> to vector<4x64xf32>
    %cst = arith.constant dense<0.000000e+00> : vector<2x64xf32>
    %6 = tpu.matmul %3, %5, %cst {dimension_numbers = #tpu.dot_dimension_numbers<[1], [0], [0], [1], [0, 0, 1, 1], [], []>} : vector<2x4xf32>, vector<4x64xf32>, vector<2x64xf32> -> vector<2x64xf32>
    %c0_3 = arith.constant 0 : index
    %c0_4 = arith.constant 0 : index
    %c0_5 = arith.constant 0 : index
    %7 = vector.load %arg6[%c0_3, %c0_4, %c0_5] : memref<4x2x64xf32, #tpu.memory_space<vmem>>, vector<1x2x64xf32>
    %8 = vector.shape_cast %7 : vector<1x2x64xf32> to vector<2x64xf32>
    %9 = vector.shape_cast %6 : vector<2x64xf32> to vector<1x2x64xf32>
    tpu.vector_store %arg6[%c0_3, %c0_4, %c0_5], %9 {strides = array<i32>} : memref<4x2x64xf32, #tpu.memory_space<vmem>>, vector<1x2x64xf32>,
    %c0_6 = arith.constant 0 : index
    %c0_7 = arith.constant 0 : index
    %c0_8 = arith.constant 0 : index
    %10 = vector.load %arg3[%c0_6, %c0_7, %c0_8] : memref<4x4x64xf32, #tpu.memory_space<vmem>>, vector<1x4x64xf32>
    %11 = vector.shape_cast %10 : vector<1x4x64xf32> to vector<4x64xf32>
    %cst_9 = arith.constant dense<0.000000e+00> : vector<2x64xf32>
    %12 = tpu.matmul %3, %11, %cst_9 {dimension_numbers = #tpu.dot_dimension_numbers<[1], [0], [0], [1], [0, 0, 1, 1], [], []>} : vector<2x4xf32>, vector<4x64xf32>, vector<2x64xf32> -> vector<2x64xf32>
    %c0_10 = arith.constant 0 : index
    %c0_11 = arith.constant 0 : index
    %c0_12 = arith.constant 0 : index
    %13 = vector.load %arg7[%c0_10, %c0_11, %c0_12] : memref<4x2x64xf32, #tpu.memory_space<vmem>>, vector<1x2x64xf32>
    %14 = vector.shape_cast %13 : vector<1x2x64xf32> to vector<2x64xf32>
    %15 = vector.shape_cast %12 : vector<2x64xf32> to vector<1x2x64xf32>
    tpu.vector_store %arg7[%c0_10, %c0_11, %c0_12], %15 {strides = array<i32>} : memref<4x2x64xf32, #tpu.memory_space<vmem>>, vector<1x2x64xf32>,
    %c1 = arith.constant 1 : index
    %c0_13 = arith.constant 0 : index
    %c0_14 = arith.constant 0 : index
    %16 = vector.load %arg2[%c1, %c0_13, %c0_14] : memref<4x4x64xf32, #tpu.memory_space<vmem>>, vector<1x4x64xf32>
    %17 = vector.shape_cast %16 : vector<1x4x64xf32> to vector<4x64xf32>
    %cst_15 = arith.constant dense<0.000000e+00> : vector<2x64xf32>
    %18 = tpu.matmul %3, %17, %cst_15 {dimension_numbers = #tpu.dot_dimension_numbers<[1], [0], [0], [1], [0, 0, 1, 1], [], []>} : vector<2x4xf32>, vector<4x64xf32>, vector<2x64xf32> -> vector<2x64xf32>
    %c1_16 = arith.constant 1 : index
    %c0_17 = arith.constant 0 : index
    %c0_18 = arith.constant 0 : index
    %19 = vector.load %arg6[%c1_16, %c0_17, %c0_18] : memref<4x2x64xf32, #tpu.memory_space<vmem>>, vector<1x2x64xf32>
    %20 = vector.shape_cast %19 : vector<1x2x64xf32> to vector<2x64xf32>
    %21 = vector.shape_cast %18 : vector<2x64xf32> to vector<1x2x64xf32>
    tpu.vector_store %arg6[%c1_16, %c0_17, %c0_18], %21 {strides = array<i32>} : memref<4x2x64xf32, #tpu.memory_space<vmem>>, vector<1x2x64xf32>,
    %c1_19 = arith.constant 1 : index
    %c0_20 = arith.constant 0 : index
    %c0_21 = arith.constant 0 : index
    %22 = vector.load %arg3[%c1_19, %c0_20, %c0_21] : memref<4x4x64xf32, #tpu.memory_space<vmem>>, vector<1x4x64xf32>
    %23 = vector.shape_cast %22 : vector<1x4x64xf32> to vector<4x64xf32>
    %cst_22 = arith.constant dense<0.000000e+00> : vector<2x64xf32>
    %24 = tpu.matmul %3, %23, %cst_22 {dimension_numbers = #tpu.dot_dimension_numbers<[1], [0], [0], [1], [0, 0, 1, 1], [], []>} : vector<2x4xf32>, vector<4x64xf32>, vector<2x64xf32> -> vector<2x64xf32>
    %c1_23 = arith.constant 1 : index
    %c0_24 = arith.constant 0 : index
    %c0_25 = arith.constant 0 : index
    %25 = vector.load %arg7[%c1_23, %c0_24, %c0_25] : memref<4x2x64xf32, #tpu.memory_space<vmem>>, vector<1x2x64xf32>
    %26 = vector.shape_cast %25 : vector<1x2x64xf32> to vector<2x64xf32>
    %27 = vector.shape_cast %24 : vector<2x64xf32> to vector<1x2x64xf32>
    tpu.vector_store %arg7[%c1_23, %c0_24, %c0_25], %27 {strides = array<i32>} : memref<4x2x64xf32, #tpu.memory_space<vmem>>, vector<1x2x64xf32>,
    %c2 = arith.constant 2 : index
    %c0_26 = arith.constant 0 : index
    %c0_27 = arith.constant 0 : index
    %28 = vector.load %arg2[%c2, %c0_26, %c0_27] : memref<4x4x64xf32, #tpu.memory_space<vmem>>, vector<1x4x64xf32>
    %29 = vector.shape_cast %28 : vector<1x4x64xf32> to vector<4x64xf32>
    %cst_28 = arith.constant dense<0.000000e+00> : vector<2x64xf32>
    %30 = tpu.matmul %3, %29, %cst_28 {dimension_numbers = #tpu.dot_dimension_numbers<[1], [0], [0], [1], [0, 0, 1, 1], [], []>} : vector<2x4xf32>, vector<4x64xf32>, vector<2x64xf32> -> vector<2x64xf32>
    %c2_29 = arith.constant 2 : index
    %c0_30 = arith.constant 0 : index
    %c0_31 = arith.constant 0 : index
    %31 = vector.load %arg6[%c2_29, %c0_30, %c0_31] : memref<4x2x64xf32, #tpu.memory_space<vmem>>, vector<1x2x64xf32>
    %32 = vector.shape_cast %31 : vector<1x2x64xf32> to vector<2x64xf32>
    %33 = vector.shape_cast %30 : vector<2x64xf32> to vector<1x2x64xf32>
    tpu.vector_store %arg6[%c2_29, %c0_30, %c0_31], %33 {strides = array<i32>} : memref<4x2x64xf32, #tpu.memory_space<vmem>>, vector<1x2x64xf32>,
    %c2_32 = arith.constant 2 : index
    %c0_33 = arith.constant 0 : index
    %c0_34 = arith.constant 0 : index
    %34 = vector.load %arg3[%c2_32, %c0_33, %c0_34] : memref<4x4x64xf32, #tpu.memory_space<vmem>>, vector<1x4x64xf32>
    %35 = vector.shape_cast %34 : vector<1x4x64xf32> to vector<4x64xf32>
    %cst_35 = arith.constant dense<0.000000e+00> : vector<2x64xf32>
    %36 = tpu.matmul %3, %35, %cst_35 {dimension_numbers = #tpu.dot_dimension_numbers<[1], [0], [0], [1], [0, 0, 1, 1], [], []>} : vector<2x4xf32>, vector<4x64xf32>, vector<2x64xf32> -> vector<2x64xf32>
    %c2_36 = arith.constant 2 : index
    %c0_37 = arith.constant 0 : index
    %c0_38 = arith.constant 0 : index
    %37 = vector.load %arg7[%c2_36, %c0_37, %c0_38] : memref<4x2x64xf32, #tpu.memory_space<vmem>>, vector<1x2x64xf32>
    %38 = vector.shape_cast %37 : vector<1x2x64xf32> to vector<2x64xf32>
    %39 = vector.shape_cast %36 : vector<2x64xf32> to vector<1x2x64xf32>
    tpu.vector_store %arg7[%c2_36, %c0_37, %c0_38], %39 {strides = array<i32>} : memref<4x2x64xf32, #tpu.memory_space<vmem>>, vector<1x2x64xf32>,
    %c3 = arith.constant 3 : index
    %c0_39 = arith.constant 0 : index
    %c0_40 = arith.constant 0 : index
    %40 = vector.load %arg2[%c3, %c0_39, %c0_40] : memref<4x4x64xf32, #tpu.memory_space<vmem>>, vector<1x4x64xf32>
    %41 = vector.shape_cast %40 : vector<1x4x64xf32> to vector<4x64xf32>
    %cst_41 = arith.constant dense<0.000000e+00> : vector<2x64xf32>
    %42 = tpu.matmul %3, %41, %cst_41 {dimension_numbers = #tpu.dot_dimension_numbers<[1], [0], [0], [1], [0, 0, 1, 1], [], []>} : vector<2x4xf32>, vector<4x64xf32>, vector<2x64xf32> -> vector<2x64xf32>
    %c3_42 = arith.constant 3 : index
    %c0_43 = arith.constant 0 : index
    %c0_44 = arith.constant 0 : index
    %43 = vector.load %arg6[%c3_42, %c0_43, %c0_44] : memref<4x2x64xf32, #tpu.memory_space<vmem>>, vector<1x2x64xf32>
    %44 = vector.shape_cast %43 : vector<1x2x64xf32> to vector<2x64xf32>
    %45 = vector.shape_cast %42 : vector<2x64xf32> to vector<1x2x64xf32>
    tpu.vector_store %arg6[%c3_42, %c0_43, %c0_44], %45 {strides = array<i32>} : memref<4x2x64xf32, #tpu.memory_space<vmem>>, vector<1x2x64xf32>,
    %c3_45 = arith.constant 3 : index
    %c0_46 = arith.constant 0 : index
    %c0_47 = arith.constant 0 : index
    %46 = vector.load %arg3[%c3_45, %c0_46, %c0_47] : memref<4x4x64xf32, #tpu.memory_space<vmem>>, vector<1x4x64xf32>
    %47 = vector.shape_cast %46 : vector<1x4x64xf32> to vector<4x64xf32>
    %cst_48 = arith.constant dense<0.000000e+00> : vector<2x64xf32>
    %48 = tpu.matmul %3, %47, %cst_48 {dimension_numbers = #tpu.dot_dimension_numbers<[1], [0], [0], [1], [0, 0, 1, 1], [], []>} : vector<2x4xf32>, vector<4x64xf32>, vector<2x64xf32> -> vector<2x64xf32>
    %c3_49 = arith.constant 3 : index
    %c0_50 = arith.constant 0 : index
    %c0_51 = arith.constant 0 : index
    %49 = vector.load %arg7[%c3_49, %c0_50, %c0_51] : memref<4x2x64xf32, #tpu.memory_space<vmem>>, vector<1x2x64xf32>
    %50 = vector.shape_cast %49 : vector<1x2x64xf32> to vector<2x64xf32>
    %51 = vector.shape_cast %48 : vector<2x64xf32> to vector<1x2x64xf32>
    tpu.vector_store %arg7[%c3_49, %c0_50, %c0_51], %51 {strides = array<i32>} : memref<4x2x64xf32, #tpu.memory_space<vmem>>, vector<1x2x64xf32>,
    %c0_52 = arith.constant 0 : index
    %c0_53 = arith.constant 0 : index
    %c0_54 = arith.constant 0 : index
    %52 = vector.load %arg6[%c0_52, %c0_53, %c0_54] : memref<4x2x64xf32, #tpu.memory_space<vmem>>, vector<4x1x64xf32>
    %53 = vector.shape_cast %52 : vector<4x1x64xf32> to vector<4x64xf32>
    %c0_55 = arith.constant 0 : index
    %c0_56 = arith.constant 0 : index
    %c0_57 = arith.constant 0 : index
    %54 = vector.load %arg7[%c0_55, %c0_56, %c0_57] : memref<4x2x64xf32, #tpu.memory_space<vmem>>, vector<4x1x64xf32>
    %55 = vector.shape_cast %54 : vector<4x1x64xf32> to vector<4x64xf32>
    %cst_58 = arith.constant dense<0.000000e+00> : vector<64x64xf32>
    %56 = tpu.matmul %55, %53, %cst_58 {dimension_numbers = #tpu.dot_dimension_numbers<[0], [0], [1], [1], [0, 1, 1, 1], [], []>} : vector<4x64xf32>, vector<4x64xf32>, vector<64x64xf32> -> vector<64x64xf32>
    %cst_59 = arith.constant 0.000000e+00 : f32
    %57 = vector.broadcast %cst_59 : f32 to vector<64x64xf32>
    %58 = arith.maximumf %56, %57 : vector<64x64xf32>
    %c0_60 = arith.constant 0 : index
    %c0_61 = arith.constant 0 : index
    %59 = vector.load %arg4[%c0_60, %c0_61] : memref<4x128xf32, #tpu.memory_space<vmem>>, vector<4x64xf32>
    %cst_62 = arith.constant dense<0.000000e+00> : vector<4x64xf32>
    %60 = tpu.matmul %59, %58, %cst_62 {dimension_numbers = #tpu.dot_dimension_numbers<[1], [0], [0], [1], [0, 0, 1, 1], [], []>} : vector<4x64xf32>, vector<64x64xf32>, vector<4x64xf32> -> vector<4x64xf32>
    %c0_63 = arith.constant 0 : index
    %c0_64 = arith.constant 0 : index
    %61 = vector.load %arg5[%c0_63, %c0_64] : memref<4x128xf32, #tpu.memory_space<vmem>>, vector<4x64xf32>
    tpu.vector_store %arg5[%c0_63, %c0_64], %60 {strides = array<i32>} : memref<4x128xf32, #tpu.memory_space<vmem>>, vector<4x64xf32>,
    %c0_65 = arith.constant 0 : index
    %c1_66 = arith.constant 1 : index
    %c0_67 = arith.constant 0 : index
    %62 = vector.load %arg6[%c0_65, %c1_66, %c0_67] : memref<4x2x64xf32, #tpu.memory_space<vmem>>, vector<4x1x64xf32>
    %63 = vector.shape_cast %62 : vector<4x1x64xf32> to vector<4x64xf32>
    %c0_68 = arith.constant 0 : index
    %c1_69 = arith.constant 1 : index
    %c0_70 = arith.constant 0 : index
    %64 = vector.load %arg7[%c0_68, %c1_69, %c0_70] : memref<4x2x64xf32, #tpu.memory_space<vmem>>, vector<4x1x64xf32>
    %65 = vector.shape_cast %64 : vector<4x1x64xf32> to vector<4x64xf32>
    %cst_71 = arith.constant dense<0.000000e+00> : vector<64x64xf32>
    %66 = tpu.matmul %65, %63, %cst_71 {dimension_numbers = #tpu.dot_dimension_numbers<[0], [0], [1], [1], [0, 1, 1, 1], [], []>} : vector<4x64xf32>, vector<4x64xf32>, vector<64x64xf32> -> vector<64x64xf32>
    %cst_72 = arith.constant 0.000000e+00 : f32
    %67 = vector.broadcast %cst_72 : f32 to vector<64x64xf32>
    %68 = arith.maximumf %66, %67 : vector<64x64xf32>
    %c0_73 = arith.constant 0 : index
    %c64 = arith.constant 64 : index
    %69 = vector.load %arg4[%c0_73, %c64] : memref<4x128xf32, #tpu.memory_space<vmem>>, vector<4x64xf32>
    %cst_74 = arith.constant dense<0.000000e+00> : vector<4x64xf32>
    %70 = tpu.matmul %69, %68, %cst_74 {dimension_numbers = #tpu.dot_dimension_numbers<[1], [0], [0], [1], [0, 0, 1, 1], [], []>} : vector<4x64xf32>, vector<64x64xf32>, vector<4x64xf32> -> vector<4x64xf32>
    %c0_75 = arith.constant 0 : index
    %c64_76 = arith.constant 64 : index
    %71 = vector.load %arg5[%c0_75, %c64_76] : memref<4x128xf32, #tpu.memory_space<vmem>>, vector<4x64xf32>
    tpu.vector_store %arg5[%c0_75, %c64_76], %70 {strides = array<i32>} : memref<4x128xf32, #tpu.memory_space<vmem>>, vector<4x64xf32>,
    return
  }
  func.func @transform_0(%arg0: i32) -> (i32, i32) {
    %c0_i32 = arith.constant 0 : i32
    %c0_i32_0 = arith.constant 0 : i32
    %c0_i32_1 = arith.constant 0 : i32
    return %c0_i32, %c0_i32_0 : i32, i32
  }
  func.func @transform_1(%arg0: i32) -> (i32, i32, i32) {
    %c0_i32 = arith.constant 0 : i32
    %c0_i32_0 = arith.constant 0 : i32
    %c0_i32_1 = arith.constant 0 : i32
    %c0_i32_2 = arith.constant 0 : i32
    return %c0_i32, %c0_i32_0, %c0_i32_1 : i32, i32, i32
  }
  func.func @transform_2(%arg0: i32) -> (i32, i32, i32) {
    %c0_i32 = arith.constant 0 : i32
    %c0_i32_0 = arith.constant 0 : i32
    %c0_i32_1 = arith.constant 0 : i32
    %c0_i32_2 = arith.constant 0 : i32
    return %c0_i32, %c0_i32_0, %c0_i32_1 : i32, i32, i32
  }
  func.func @transform_3(%arg0: i32) -> (i32, i32) {
    %c0_i32 = arith.constant 0 : i32
    %c0_i32_0 = arith.constant 0 : i32
    return %c0_i32, %arg0 : i32, i32
  }
  func.func @transform_4(%arg0: i32) -> (i32, i32) {
    %c0_i32 = arith.constant 0 : i32
    %c0_i32_0 = arith.constant 0 : i32
    return %c0_i32, %arg0 : i32, i32
  }
}

</mosaic_0001>

<bundles_post_ra>
// kernel: ba_pallas.2
= control target key start
LH: loop header
LB: loop body
LE: loop exit
PB: predicated region body
PF: predicated region fallthrough
CT: control target
= control target key end

     0   :  { %v134_v1 = vmov 0   ;;  %vm43_vm0 = vcmask 1043456   ;;  %vm36_vm1 = vcmask 31744   ;;  %s195_s0 = inlined_call_operand.vmem [shape: f32[4,256], index: 0, kind: input, shape index: {}]   ;;  %s196_s2 = inlined_call_operand.vmem [shape: f32[12,1], index: 2, kind: input, shape index: {}]   ;;  %s197_s1 = inlined_call_operand.vmem [shape: f32[12,4], index: 1, kind: input, shape index: {}]   ;;  %s198_s3 = inlined_call_operand.vmem [shape: f32[4,256], index: 3, kind: output, shape index: {0}]   ;;  %s199_s4 = inlined_call_operand.vmem [shape: f32[4,256], index: 4, kind: output, shape index: {1}]   ;;  %s200_s5 = inlined_call_operand.vmem [shape: f32[4,256], index: 5, kind: output, shape index: {2}]  }
   0x1   :  { %v19_v0 = vld [vmem:[%s195_s0] sm:$0xff]  ;;  %133 = vset.pattern.permute.xlu0 %v134_v1  ;;  %v18_v4 = vld [vmem:[%s197_s1 + $0x8] sm:$0xf] }
   0x2   :  { %33 = vst [vmem:[#allocation1] ss:$2 sm:$0xff] %v19_v0  ;;  %v20_v2 = vld [vmem:[%s196_s2] sm:$0xff]  ;;  %v21_v7 = vld [vmem:[%s196_s2 + $0x8] sm:$0xf] }
   0x3   :  { %24 = vperm.xlu0 %133, %v20_v2   ;;  %v17_v3 = vld [vmem:[%s197_s1] sm:$0xff] }
   0x9   :  { %v34_v5 = vld.sshfl [vmem:[#allocation1] sm:$0xff pattern:$0x75316420]  ;;  %v35_v6 = vld.sshfl [vmem:[#allocation1 + $0x8] sm:$0xff pattern:$0x75316420] }
   0xa   :  { %124 = vmatpush.msk.msra.mxu0 %vm43_vm0, %v34_v5  ;;  %130 = vmatpush.msk.msra.mxu2 %vm43_vm0, %v34_v5 }
   0xb   :  { %127 = vmatpush.msk.msra.mxu1 %vm43_vm0, %v35_v6  ;;  %131 = vmatpush.msk.msra.mxu3 %vm43_vm0, %v35_v6 }
   0xc   :  { %125 = vmatmul.msk.f32.vlgmr.msra.gmra.mxu0 %vm36_vm1, %v17_v3  ;;  %126 = vmatmul.msk.f32.vlgmr.msra.gmra.mxu2 %vm36_vm1, %v18_v4 }
   0xd   :  { %128 = vmatmul.msk.f32.vlgmr.msra.gmra.mxu1 %vm36_vm1, %v17_v3  ;;  %129 = vmatmul.msk.f32.vlgmr.msra.gmra.mxu3 %vm36_vm1, %v18_v4 }
   0xe   :  { %29 = vperm.xlu0 %133, %v21_v7  }
  0x75   :  { %v25_v8 = vpop.permute.xlu0 %24 }
  0x80   :  { %v30_v14 = vpop.permute.xlu0 %29 }
  0x89   :  { %v65_v9 = vpop.f32.mrf.mxu0 }
  0x8a   :  { %v66_v10 = vadd.f32 %v65_v9, %v25_v8  ;;  %v88_v11 = vpop.f32.mrf.mxu1 }
  0x8b   :  { %v89_v12 = vadd.f32 %v88_v11, %v25_v8 }
  0x8c   :  { %100 = vst.sshfl [vmem:[#allocation1] sm:$0xff pattern:$0x75316420] %v66_v10 }
  0x8d   :  { %v96_v13 = vrot.slane %v89_v12, 4  ;;  %101 = vst.sshfl [vmem:[#allocation1 + $0x8] sm:$0xff pattern:$0x75316420] %v89_v12 }
  0x8f   :  { %v97_v15 = vsel %vm43_vm0, %v66_v10, %v96_v13  ;;  %v68_v16 = vpop.f32.mrf.mxu2 }
  0x90   :  { %99 = vst [vmem:[%s198_s3] sm:$0xff] %v97_v15  ;;  %v91_v17 = vpop.f32.mrf.mxu3  ;;  %v69_v19 = vadd.f32 %v68_v16, %v30_v14 }
  0x91   :  { %v92_v18 = vadd.f32 %v91_v17, %v30_v14 }
  0x93   :  { %v108_v20 = vrot.slane %v92_v18, 4 }
  0x94   :  { %v103_v21 = vld [vmem:[#allocation1 + $0x1] ss:$2 sm:$0xff] }
  0x95   :  { %105 = vst [vmem:[%s199_s4] sm:$0xff] %v103_v21  ;;  %v109_v22 = vsel %vm43_vm0, %v69_v19, %v108_v20 }
  0x96   :  { %111 = vst [vmem:[%s200_s5] sm:$0xff] %v109_v22 }

// kernel: ba_pallas.3
= control target key start
LH: loop header
LB: loop body
LE: loop exit
PB: predicated region body
PF: predicated region fallthrough
CT: control target
= control target key end

     0   :  { %s901_s15 = smov 0   ;;  %s1021_s0 = inlined_call_operand.vmem [shape: f32[4,4], index: 0, kind: input, shape index: {}]   ;;  %s1022_s1 = inlined_call_operand.vmem [shape: f32[4,4,64], index: 1, kind: input, shape index: {}]   ;;  %s1023_s2 = inlined_call_operand.vmem [shape: f32[4,4,64], index: 2, kind: input, shape index: {}]   ;;  %s1024_s3 = inlined_call_operand.vmem [shape: f32[4,256], index: 3, kind: input, shape index: {}]   ;;  %s1025_s4 = inlined_call_operand.vmem [shape: f32[4,256], index: 4, kind: output, shape index: {}]  }
   0x1 LB: > { %s907_s16 = sadd.s32 4294967295, %s873_s15   ;;  %p807_p0 = scmp.ge.s32.totalorder %s873_s15, 1  ;;  %s873_s15 = sphi %s901_s15, %s14_s15  }
   0x2   : > { %p161_p1 = scmp.lt.s32.totalorder %s873_s15, 3 }
   0x4   : > { %p162_p2 = pnand %p807_p0, %p161_p1 }
   0x5   : > { %s810_s21 = sshll.u32 (!%p162_p2), %s907_s16, 1  ;;  %p185_p3 = scmp.lt.s32.totalorder (!%p162_p2), %s907_s16, 1 }
   0x6   : > { %165 = sbr.rel (%p162_p2) target bundleno = 782 (0x30e), region = 36  ;;  %s194_s24 = scalar_lea.vmem (!%p162_p2), %s1021_s0, %s810_s21 }
   0x7   : > { %s875_s17 = smov (!%p162_p2), 64  }
   0xb   : > { %vm201_vm0 = vcmask 1043456   ;;  %v227_v0 = vld [vmem:[%s1023_s2] sm:$0xf]  ;;  %v818_v1 = vld [vmem:[%s1023_s2 + $0x4] sm:$0xf]  ;;  %vm197_vm1 = vcmask 31744  }
   0xc   : > { %813 = vmatpush.msk.msra.mxu1 %vm201_vm0, %v227_v0  ;;  %819 = vmatpush.msk.msra.mxu3 %vm201_vm0, %v818_v1  ;;  %v824_v2 = vld [vmem:[%s1023_s2 + $0x8] sm:$0xf]  ;;  %v830_v3 = vld [vmem:[%s1023_s2 + $0xc] sm:$0xf]  ;;  %v195_v4 = vld [vmem:[%s194_s24] sm:$0x3] }
   0xd   : > { %814 = vmatmul.msk.f32.vlgmr.msra.gmra.mxu1 %vm197_vm1, %v195_v4  ;;  %820 = vmatmul.msk.f32.vlgmr.msra.gmra.mxu3 %vm197_vm1, %v195_v4  ;;  %v815_v5 = vld [vmem:[%s1022_s1 + $0x4] sm:$0xf]  ;;  %v196_v6 = vld [vmem:[%s1022_s1] sm:$0xf]  ;;  %v827_v7 = vld [vmem:[%s1022_s1 + $0xc] sm:$0xf] }
   0xe   : > { %825 = vmatpush.msk.msrb.mxu1 %vm201_vm0, %v824_v2  ;;  %831 = vmatpush.msk.msrb.mxu3 %vm201_vm0, %v830_v3  ;;  %v821_v8 = vld [vmem:[%s1022_s1 + $0x8] sm:$0xf]  ;;  %vm225_vm2 = vcmask 517120   ;;  %vm427_vm3 = vcmask 1041409   ;;  %vm430_vm4 = vcmask 1042434   ;;  %vm433_vm5 = vcmask 1043459  }
   0xf   : > { %816 = vmatpush.msk.msra.mxu2 %vm201_vm0, %v815_v5  ;;  %811 = vmatpush.msk.msra.mxu0 %vm201_vm0, %v196_v6  ;;  %s1027_s16 = smov (!%p185_p3, %s907_s16), 1  ;;  %vm554_vm6 = vcmask 523264   ;;  %vm578_vm7 = vcmask 519168   ;;  %vm746_vm8 = vcmask 1043968  }
  0x10   : > { %817 = vmatmul.msk.f32.vlgmr.msra.gmra.mxu2 %vm197_vm1, %v195_v4  ;;  %812 = vmatmul.msk.f32.vlgmr.msra.gmra.mxu0 %vm197_vm1, %v195_v4  ;;  %s808_s11 = sshll.u32 %s1027_s16, 2 }
  0x11   : > { %828 = vmatpush.msk.msrb.mxu2 %vm201_vm0, %v827_v7  ;;  %822 = vmatpush.msk.msrb.mxu0 %vm201_vm0, %v821_v8  ;;  %s996_s14 = scalar_lea.vmem %s1024_s3, %s808_s11  ;;  %s192_s20 = scalar_lea.vmem %s1025_s4, %s808_s11 }
  0x12   : > { %v716_v1 = vld [vmem:[%s996_s14] sm:$0xf] }
  0x13   : > { %718 = vrot.lane.b32.xlu1 %v716_v1, %s875_s17 }
  0x15   : > { %826 = vmatmul.msk.f32.vlgmr.msrb.gmra.mxu1 %vm197_vm1, %v195_v4  ;;  %832 = vmatmul.msk.f32.vlgmr.msrb.gmra.mxu3 %vm197_vm1, %v195_v4 }
  0x18   : > { %829 = vmatmul.msk.f32.vlgmr.msrb.gmra.mxu2 %vm197_vm1, %v195_v4  ;;  %823 = vmatmul.msk.f32.vlgmr.msrb.gmra.mxu0 %vm197_vm1, %v195_v4 }
  0x8a   : > { %v248_v9 = vpop.f32.mrf.mxu1 }
  0x8b   : > { %251 = vst.msk [vmem:[#allocation3] sm:$0x3] %vm225_vm2, %v248_v9 }
  0x8d   : > { %v222_v33 = vpop.f32.mrf.mxu0 }
  0x8e   : > { %226 = vst.msk [vmem:[#allocation2] sm:$0x3] %vm225_vm2, %v222_v33 }
  0x90   : > { %v301_v10 = vpop.f32.mrf.mxu3 }
  0x91   : > { %305 = vst.msk [vmem:[#allocation3 + $0x2] sm:$0x3] %vm225_vm2, %v301_v10 }
  0x92   : > { %v355_v11 = vpop.f32.mrf.mxu1  ;;  %v584_v16 = vld [vmem:[#allocation3 + $0x1] sm:$0x1]  ;;  %v418_v27 = vld [vmem:[#allocation3] sm:$0x1] }
  0x93   : > { %359 = vst.msk [vmem:[#allocation3 + $0x4] sm:$0x3] %vm225_vm2, %v355_v11  ;;  %v274_v34 = vpop.f32.mrf.mxu2 }
  0x94   : > { %278 = vst.msk [vmem:[#allocation2 + $0x2] sm:$0x3] %vm225_vm2, %v274_v34 }
  0x95   : > { %v328_v35 = vpop.f32.mrf.mxu0  ;;  %v580_v40 = vld [vmem:[#allocation2 + $0x1] sm:$0x1]  ;;  %v414_v50 = vld [vmem:[#allocation2] sm:$0x1] }
  0x96   : > { %332 = vst.msk [vmem:[#allocation2 + $0x4] sm:$0x3] %vm225_vm2, %v328_v35 }
  0x98   : > { %v409_v12 = vpop.f32.mrf.mxu3  ;;  %v585_v13 = vld [vmem:[#allocation3 + $0x3] sm:$0x1]  ;;  %v419_v23 = vld [vmem:[#allocation3 + $0x2] sm:$0x1] }
  0x99   : > { %413 = vst.msk [vmem:[#allocation3 + $0x6] sm:$0x3] %vm225_vm2, %v409_v12  ;;  %v592_v15 = vrot.slane %v585_v13, 7  ;;  %v426_v25 = vrot.slane %v419_v23, 7 }
  0x9a   : > { %v586_v14 = vld [vmem:[#allocation3 + $0x5] sm:$0x1]  ;;  %v420_v24 = vld [vmem:[#allocation3 + $0x4] sm:$0x1] }
  0x9b   : > { %v594_v17 = vrot.slane %v586_v14, 6  ;;  %v593_v18 = vsel %vm427_vm3, %v592_v15, %v584_v16  ;;  %v429_v28 = vrot.slane %v420_v24, 6  ;;  %v428_v29 = vsel %vm427_vm3, %v426_v25, %v418_v27  ;;  %v382_v36 = vpop.f32.mrf.mxu2  ;;  %v581_v37 = vld [vmem:[#allocation2 + $0x3] sm:$0x1]  ;;  %v415_v47 = vld [vmem:[#allocation2 + $0x2] sm:$0x1] }
  0x9c   : > { %386 = vst.msk [vmem:[#allocation2 + $0x6] sm:$0x3] %vm225_vm2, %v382_v36  ;;  %v635_v39 = vrot.slane %v581_v37, 7  ;;  %v472_v49 = vrot.slane %v415_v47, 7 }
  0x9d   : > { %v595_v21 = vsel %vm430_vm4, %v594_v17, %v593_v18  ;;  %v431_v31 = vsel %vm430_vm4, %v429_v28, %v428_v29  ;;  %v582_v38 = vld [vmem:[#allocation2 + $0x5] sm:$0x1]  ;;  %v416_v48 = vld [vmem:[#allocation2 + $0x4] sm:$0x1] }
  0x9e   : > { %v637_v42 = vrot.slane %v582_v38, 6  ;;  %v636_v43 = vsel %vm427_vm3, %v635_v39, %v580_v40  ;;  %v474_v52 = vrot.slane %v416_v48, 6  ;;  %v473_v53 = vsel %vm427_vm3, %v472_v49, %v414_v50 }
  0xa0   : > { %v587_v19 = vld [vmem:[#allocation3 + $0x7] sm:$0x1]  ;;  %v421_v26 = vld [vmem:[#allocation3 + $0x6] sm:$0x1]  ;;  %v638_v45 = vsel %vm430_vm4, %v637_v42, %v636_v43  ;;  %v475_v55 = vsel %vm430_vm4, %v474_v52, %v473_v53  ;;  %v553_v42 = vld [vmem:[%s996_s14] sm:$0xf] }
  0xa1   : > { %v596_v20 = vrot.slane %v587_v19, 5  ;;  %v432_v30 = vrot.slane %v421_v26, 5  ;;  %v719_v26 = vpop.permute.xlu1 %718 }
  0xa3   : > { %v597_v22 = vsel %vm433_vm5, %v596_v20, %v595_v21  ;;  %v434_v32 = vsel %vm433_vm5, %v432_v30, %v431_v31  ;;  %v583_v41 = vld [vmem:[#allocation2 + $0x7] sm:$0x1]  ;;  %v417_v51 = vld [vmem:[#allocation2 + $0x6] sm:$0x1] }
  0xa4   : > { %599 = vxpose.xlu0.b32.start.end [1/1] (short) (narrow) %v597_v22, 64  ;;  %v639_v44 = vrot.slane %v583_v41, 5  ;;  %v476_v54 = vrot.slane %v417_v51, 5 }
  0xa6   : > { %v640_v46 = vsel %vm433_vm5, %v639_v44, %v638_v45  ;;  %v477_v56 = vsel %vm433_vm5, %v476_v54, %v475_v55 }
  0xa7   : > { %843 = vmatpush.msk.msra.mxu2 %vm201_vm0, %v640_v46  ;;  %856 = vmatpush.msk.msra.mxu3 %vm201_vm0, %v640_v46 }
  0xa8   : > { %833 = vmatpush.msk.msra.mxu0 %vm201_vm0, %v477_v56  ;;  %855 = vmatpush.msk.msra.mxu1 %vm201_vm0, %v477_v56 }
  0xe4   : > { %436 = vxpose.xlu0.b32.start.end [1/1] (short) (narrow) %v434_v32, 64 }
 0x148   : > { %v615_v57 = vpop.trf.xlu0 }
 0x149   : > { %844 = vmatmul.msk.f32.vlgmr.msra.gmra.mxu2 %vm197_vm1, %v615_v57 }
 0x150   : > { %v616_v58 = vpop.trf.xlu0 }
 0x151   : > { %845 = vmatmul.msk.f32.gmra.mxu2 %vm197_vm1, %v616_v58 }
 0x158   : > { %v617_v59 = vpop.trf.xlu0 }
 0x159   : > { %846 = vmatmul.msk.f32.gmra.mxu2 %vm197_vm1, %v617_v59 }
 0x160   : > { %v618_v60 = vpop.trf.xlu0 }
 0x161   : > { %847 = vmatmul.msk.f32.gmra.mxu2 %vm197_vm1, %v618_v60 }
 0x168   : > { %v619_v61 = vpop.trf.xlu0 }
 0x169   : > { %848 = vmatmul.msk.f32.gmra.mxu2 %vm197_vm1, %v619_v61 }
 0x170   : > { %v620_v62 = vpop.trf.xlu0 }
 0x171   : > { %849 = vmatmul.msk.f32.vlgmr.msra.gmra.mxu3 %vm197_vm1, %v620_v62 }
 0x178   : > { %v621_v63 = vpop.trf.xlu0 }
 0x179   : > { %850 = vmatmul.msk.f32.gmra.mxu3 %vm197_vm1, %v621_v63 }
 0x180   : > { %v622_v0 = vpop.trf.xlu0 }
 0x181   : > { %851 = vmatmul.msk.f32.gmra.mxu3 %vm197_vm1, %v622_v0 }
 0x188   : > { %v452_v2 = vpop.trf.xlu0 }
 0x189   : > { %834 = vmatmul.msk.f32.vlgmr.msra.gmra.mxu0 %vm197_vm1, %v452_v2 }
 0x190   : > { %v453_v3 = vpop.trf.xlu0 }
 0x191   : > { %835 = vmatmul.msk.f32.gmra.mxu0 %vm197_vm1, %v453_v3 }
 0x198   : > { %v454_v4 = vpop.trf.xlu0 }
 0x199   : > { %836 = vmatmul.msk.f32.gmra.mxu0 %vm197_vm1, %v454_v4 }
 0x1a0   : > { %v455_v5 = vpop.trf.xlu0 }
 0x1a1   : > { %837 = vmatmul.msk.f32.gmra.mxu0 %vm197_vm1, %v455_v5 }
 0x1a8   : > { %v456_v6 = vpop.trf.xlu0 }
 0x1a9   : > { %838 = vmatmul.msk.f32.gmra.mxu0 %vm197_vm1, %v456_v6 }
 0x1b0   : > { %v457_v7 = vpop.trf.xlu0 }
 0x1b1   : > { %839 = vmatmul.msk.f32.vlgmr.msra.gmra.mxu1 %vm197_vm1, %v457_v7 }
 0x1b8   : > { %v458_v8 = vpop.trf.xlu0 }
 0x1b9   : > { %840 = vmatmul.msk.f32.gmra.mxu1 %vm197_vm1, %v458_v8 }
 0x1c0   : > { %v459_v9 = vpop.trf.xlu0 }
 0x1c1   : > { %841 = vmatmul.msk.f32.gmra.mxu1 %vm197_vm1, %v459_v9 }
 0x1cc   : > { %v684_v10 = vpop.f32.mrf.mxu2 }
 0x1cd   : > { %v708_v25 = vmax.f32 %v684_v10, 0.0 }
 0x1d4   : > { %v687_v11 = vpop.f32.mrf.mxu2 }
 0x1d5   : > { %v709_v24 = vmax.f32 %v687_v11, 0.0 }
 0x1dc   : > { %v690_v12 = vpop.f32.mrf.mxu2 }
 0x1dd   : > { %v710_v23 = vmax.f32 %v690_v12, 0.0 }
 0x1e4   : > { %v693_v15 = vpop.f32.mrf.mxu2 }
 0x1e5   : > { %v711_v22 = vmax.f32 %v693_v15, 0.0 }
 0x1ec   : > { %v696_v19 = vpop.f32.mrf.mxu2 }
 0x1ed   : > { %v712_v21 = vmax.f32 %v696_v19, 0.0 }
 0x1f4   : > { %v699_v13 = vpop.f32.mrf.mxu3 }
 0x1f5   : > { %v713_v20 = vmax.f32 %v699_v13, 0.0 }
 0x1fc   : > { %v702_v14 = vpop.f32.mrf.mxu3 }
 0x1fd   : > { %v714_v18 = vmax.f32 %v702_v14, 0.0 }
 0x204   : > { %v705_v16 = vpop.f32.mrf.mxu3 }
 0x205   : > { %v715_v17 = vmax.f32 %v705_v16, 0.0 }
 0x206   : > { %v521_v27 = vpop.f32.mrf.mxu0 }
 0x207   : > { %730 = vmatpush.msrb.mxu3 %v715_v17  ;;  %v545_v43 = vmax.f32 %v521_v27, 0.0 }
 0x209   : > { %731 = vmatpush.msrb.mxu3 %v714_v18 }
 0x20b   : > { %732 = vmatpush.msrb.mxu3 %v713_v20 }
 0x20d   : > { %733 = vmatpush.msrb.mxu3 %v712_v21 }
 0x20e   : > { %v524_v28 = vpop.f32.mrf.mxu0 }
 0x20f   : > { %734 = vmatpush.msrb.mxu3 %v711_v22  ;;  %v546_v41 = vmax.f32 %v524_v28, 0.0 }
 0x211   : > { %735 = vmatpush.msrb.mxu3 %v710_v23 }
 0x213   : > { %736 = vmatpush.msrb.mxu3 %v709_v24 }
 0x215   : > { %737 = vmatpush.msrb.mxu3 %v708_v25 }
 0x216   : > { %852 = vmatmul.msk.f32.vlgmr.msrb.gmra.mxu3 %vm554_vm6, %v719_v26  ;;  %v527_v29 = vpop.f32.mrf.mxu0 }
 0x217   : > { %v547_v40 = vmax.f32 %v527_v29, 0.0 }
 0x21e   : > { %v530_v32 = vpop.f32.mrf.mxu0 }
 0x21f   : > { %v548_v39 = vmax.f32 %v530_v32, 0.0 }
 0x226   : > { %v533_v36 = vpop.f32.mrf.mxu0 }
 0x227   : > { %v549_v38 = vmax.f32 %v533_v36, 0.0 }
 0x22e   : > { %v536_v30 = vpop.f32.mrf.mxu1 }
 0x22f   : > { %v550_v37 = vmax.f32 %v536_v30, 0.0 }
 0x236   : > { %v539_v31 = vpop.f32.mrf.mxu1 }
 0x237   : > { %v551_v34 = vmax.f32 %v539_v31, 0.0 }
 0x23e   : > { %v542_v33 = vpop.f32.mrf.mxu1 }
 0x23f   : > { %v552_v35 = vmax.f32 %v542_v33, 0.0 }
 0x241   : > { %566 = vmatpush.msrb.mxu1 %v552_v35 }
 0x243   : > { %567 = vmatpush.msrb.mxu1 %v551_v34 }
 0x245   : > { %568 = vmatpush.msrb.mxu1 %v550_v37 }
 0x247   : > { %569 = vmatpush.msrb.mxu1 %v549_v38 }
 0x249   : > { %570 = vmatpush.msrb.mxu1 %v548_v39 }
 0x24b   : > { %571 = vmatpush.msrb.mxu1 %v547_v40 }
 0x24d   : > { %572 = vmatpush.msrb.mxu1 %v546_v41 }
 0x24f   : > { %573 = vmatpush.msrb.mxu1 %v545_v43 }
 0x250   : > { %842 = vmatmul.msk.f32.vlgmr.msrb.gmra.mxu1 %vm554_vm6, %v553_v42 }
 0x299   : > { %v739_v44 = vpop.f32.mrf.mxu3 }
 0x29a   : > { %743 = vrot.lane.b32.xlu1 %v739_v44, %s875_s17 }
 0x2cd   : > { %v575_v45 = vpop.f32.mrf.mxu1 }
 0x2ce   : > { %579 = vst.msk [vmem:[%s192_s20] sm:$0xf] %vm578_vm7, %v575_v45 }
 0x30c   : > { %v744_v46 = vpop.permute.xlu1 %743 }
 0x30d   : > { %747 = vst.msk [vmem:[%s192_s20] sm:$0xf] %vm746_vm8, %v744_v46 }
 0x30e PF: > { %s14_s15 = sadd.s32 1, %s873_s15  }
 0x30f   : > { %p11_p4 = scmp.ge.s32.totalorder %s14_s15, 4  }
 0x311   :  { %13 = sbr.rel (!%p11_p4) target bundleno = 1 (0x1), region = 79 }

</bundles_post_ra>
